<compile_context>
chip_gen: v7x
topology: tpu7x:2x2x1
jax: 0.10.0
libtpu: 0.0.40
codegen_flags: <defaults>
</compile_context>

<pallas_src>
import jax
import jax.numpy as jnp
from jax.experimental import pallas as pl
from jax.experimental.pallas import tpu as pltpu

MAX_BLOCK_ELEMS = 512 * 1024      # ~2 MiB per f32 block (safe on v5e/v6e/v7x)
SMALL_FALLBACK_ELEMS = 1 << 17    # below this, plain jnp is strictly faster


def _gaussian_kernel(params_ref, x_ref, o_ref):
    mu = params_ref[0]                       # SMEM scalar (f32)
    neg_inv_two_sigma_sq = params_ref[1]     # SMEM scalar (f32): -1/(2*sigma^2)
    x = x_ref[...].astype(jnp.float32)
    d = x - mu
    o_ref[...] = jnp.exp((d * d) * neg_inv_two_sigma_sq).astype(o_ref.dtype)


def gaussian_kernel(x: jax.Array, mu: float = 1.0, sigma: float = 1.0,
                    *, min_pallas_elems: int = SMALL_FALLBACK_ELEMS) -> jax.Array:
    """Applies exp(-(x - mu)^2 / (2 * sigma^2)) elementwise via a Pallas TPU kernel."""
    assert jnp.issubdtype(x.dtype, jnp.floating), (
        f"GaussianKernel expects a floating-point input, got {x.dtype}")

    orig_shape = x.shape
    total = int(x.size)
    if total == 0:
        return x  # degenerate input: nothing to compute

    neg_inv = -1.0 / (2.0 * float(sigma) * float(sigma))

    # Small-input fallback: grid/pallas_call fixed costs dominate tiny tensors;
    # plain jnp fuses into surrounding XLA ops.
    if total < min_pallas_elems:
        d = x.astype(jnp.float32) - jnp.float32(mu)
        return jnp.exp((d * d) * jnp.float32(neg_inv)).astype(x.dtype)

    dtype = x.dtype
    itemsize = jnp.dtype(dtype).itemsize
    # sublane multiple for the (8,128) tiling constraint: 8 (f32), 16 (bf16)
    sub_mult = max(8, 32 // itemsize)

    # Adaptive lane width: largest multiple of 128 dividing total -> no padding,
    # still unmasked full-width (multiple-of-128) stores. Pad only if none fits.
    lane_w = None
    for cand in (1024, 512, 256, 128):
        if total % cand == 0:
            lane_w = cand
            break
    needs_pad = lane_w is None
    if needs_pad:
        lane_w = 128

    rows = pl.cdiv(total, lane_w)
    padded = rows * lane_w

    x_flat = x.reshape(-1)
    if needs_pad and padded != total:
        x_flat = jnp.pad(x_flat, (0, padded - total))
    x2d = x_flat.reshape(rows, lane_w)

    # Keep blocks ~2 MiB f32: larger tm for narrower lane widths.
    max_tm = max(sub_mult, (MAX_BLOCK_ELEMS // lane_w) // sub_mult * sub_mult)
    if rows <= max_tm:
        tm = rows            # block equals full array dims -> always legal
    else:
        tm = max_tm          # multiple of sub_mult; partial last block handled by Pallas

    params = jnp.array([mu, neg_inv], dtype=jnp.float32)

    cost = pl.CostEstimate(
        flops=3 * total,                       # sub, mul, mul
        transcendentals=total,                 # exp
        bytes_accessed=2 * total * itemsize,   # read + write (HBM-bound)
    )

    out2d = pl.pallas_call(
        _gaussian_kernel,
        out_shape=jax.ShapeDtypeStruct(x2d.shape, dtype),
        grid=(pl.cdiv(rows, tm),),
        in_specs=[
            pl.BlockSpec(memory_space=pltpu.MemorySpace.SMEM),   # (mu, -1/(2*sigma^2))
            pl.BlockSpec((tm, lane_w), lambda i: (i, 0)),
        ],
        out_specs=pl.BlockSpec((tm, lane_w), lambda i: (i, 0)),
        compiler_params=pltpu.CompilerParams(
            dimension_semantics=("parallel",),
        ),
        cost_estimate=cost,
    )(params, x2d)

    if needs_pad and padded != total:
        return out2d.reshape(-1)[:total].reshape(orig_shape)
    return out2d.reshape(orig_shape)


if __name__ == "__main__":
    key = jax.random.PRNGKey(0)
    mu, sigma = 1.0, 1.0

    def ref_fn(x):
        return jnp.exp(-((x - mu) ** 2) / 2.0 / sigma**2)

    # 1) Small NCHW input (batch=2, channels=4, 16x16 spatial); force the Pallas
    #    path so the kernel itself is exercised (2048 elems -> lane_w=1024, no pad).
    k1, k2 = jax.random.split(key)
    x1 = jax.random.normal(k1, (2, 4, 16, 16), dtype=jnp.float32)
    out1 = jax.block_until_ready(gaussian_kernel(x1, mu=mu, sigma=sigma,
                                                 min_pallas_elems=0))
    assert out1.shape == x1.shape and out1.dtype == x1.dtype
    assert jnp.allclose(out1, ref_fn(x1), atol=1e-6, rtol=1e-6)

    # 2) Awkward shape (1155 elems, not 128-aligned) -> exercises the pad fallback.
    x2 = jax.random.normal(k2, (3, 5, 7, 11), dtype=jnp.float32)
    out2 = jax.block_until_ready(gaussian_kernel(x2, mu=mu, sigma=sigma,
                                                 min_pallas_elems=0))
    assert out2.shape == x2.shape and out2.dtype == x2.dtype
    assert jnp.allclose(out2, ref_fn(x2), atol=1e-6, rtol=1e-6)

    # 3) Default threshold -> small-input jnp fallback path.
    out3 = jax.block_until_ready(gaussian_kernel(x1, mu=mu, sigma=sigma))
    assert jnp.allclose(out3, ref_fn(x1), atol=1e-6, rtol=1e-6)

    print("KERNEL_OK")
</pallas_src>

<mosaic_0001>
module attributes {stable_mosaic.version = 11 : i64} {
  func.func @_gaussian_kernel(%arg0: i32, %arg1: memref<2xf32, #tpu.memory_space<smem>>, %arg2: memref<2x1024xf32, #tpu.memory_space<vmem>>, %arg3: memref<2x1024xf32, #tpu.memory_space<vmem>>) attributes {dimension_semantics = [#tpu.dimension_semantics<parallel>], iteration_bounds = array<i64: 1>, scalar_prefetch = 0 : i64, scratch_operands = 0 : i64, tpu.core_type = #tpu.core_type<tc>, window_params = [{transform_indices = @transform_0, window_bounds = array<i64: 2>}, {transform_indices = @transform_1, window_bounds = array<i64: 2, 1024>}, {transform_indices = @transform_2, window_bounds = array<i64: 2, 1024>}]} {
    %c0 = arith.constant 0 : index
    %0 = memref.load %arg1[%c0] : memref<2xf32, #tpu.memory_space<smem>>
    %c1 = arith.constant 1 : index
    %1 = memref.load %arg1[%c1] : memref<2xf32, #tpu.memory_space<smem>>
    %c0_0 = arith.constant 0 : index
    %c0_1 = arith.constant 0 : index
    %2 = vector.load %arg2[%c0_0, %c0_1] : memref<2x1024xf32, #tpu.memory_space<vmem>>, vector<2x1024xf32>
    %3 = vector.broadcast %0 : f32 to vector<2x1024xf32>
    %4 = arith.subf %2, %3 : vector<2x1024xf32>
    %5 = arith.mulf %4, %4 : vector<2x1024xf32>
    %6 = vector.broadcast %1 : f32 to vector<2x1024xf32>
    %7 = arith.mulf %5, %6 : vector<2x1024xf32>
    %8 = math.exp %7 : vector<2x1024xf32>
    %c0_2 = arith.constant 0 : index
    %c0_3 = arith.constant 0 : index
    %9 = vector.load %arg3[%c0_2, %c0_3] : memref<2x1024xf32, #tpu.memory_space<vmem>>, vector<2x1024xf32>
    tpu.vector_store %arg3[%c0_2, %c0_3], %8 {strides = array<i32>} : memref<2x1024xf32, #tpu.memory_space<vmem>>, vector<2x1024xf32>,
    return
  }
  func.func @transform_0(%arg0: i32) -> i32 {
    %c0_i32 = arith.constant 0 : i32
    %c0_i32_0 = arith.constant 0 : i32
    return %c0_i32 : i32
  }
  func.func @transform_1(%arg0: i32) -> (i32, i32) {
    %c0_i32 = arith.constant 0 : i32
    %c0_i32_0 = arith.constant 0 : i32
    return %arg0, %c0_i32 : i32, i32
  }
  func.func @transform_2(%arg0: i32) -> (i32, i32) {
    %c0_i32 = arith.constant 0 : i32
    %c0_i32_0 = arith.constant 0 : i32
    return %arg0, %c0_i32 : i32, i32
  }
}

</mosaic_0001>

<bundles_post_ra>
// kernel: tpu_custom_call.1
= control target key start
LH: loop header
LB: loop body
LE: loop exit
PB: predicated region body
PF: predicated region fallthrough
CT: control target
= control target key end

     0   :  { %7 = vsyncpa [#allocation5], 0  ;;  %s191_s0 = inlined_call_operand.hbm [shape: f32[2], index: 0, kind: input, shape index: {}]   ;;  %s192_s1 = inlined_call_operand.hbm [shape: f32[2,1024], index: 1, kind: input, shape index: {}]   ;;  %s193_s2 = inlined_call_operand.hbm [shape: f32[2,1024], index: 2, kind: output, shape index: {}]  }
   0x1   :  { %8 = vsyncpa [#allocation3], 0 }
   0x2   :  { %9 = vsyncpa [#allocation4], 0  ;;  %s77_s11 = scalar_lea.hbm %s191_s0, 16 }
   0x3   :  { %p78_p0 = scmp.ne.s32.totalorder %s191_s0, %s77_s11  ;;  %p81_p1 = scmp.lt.u32.totalorder %s77_s11, %s191_s0 }
   0x5   :  { %p83_p2 = pnand %p81_p1, %p78_p0 }
   0x7   :  { %86 = shalt.err (!%p83_p2)
}
   0x8   :  { %s137_s16 = smov [#allocation2]   ;;  %s138_s19 = smov [#allocation6]  }
   0x9   :  { %17 = dma.hbm_to_smem %s191_s0, 16, %s137_s16, [#allocation5]  }
   0xa   :  { %s24_s20 = sshll.u32 %s138_s19, 4  ;;  %s87_s23 = scalar_lea.hbm %s192_s1, 256  ;;  %s25_s20 = int_to_ptr.vmem [resolvable:$true] %s24_s20 }
   0xb   :  { %p88_p3 = scmp.ne.s32.totalorder %s192_s1, %s87_s23  ;;  %p91_p4 = scmp.lt.u32.totalorder %s87_s23, %s192_s1 }
   0xd   :  { %p93_p5 = pnand %p91_p4, %p88_p3 }
   0xf   :  { %96 = shalt.err (!%p93_p5)
}
  0x10   :  { %s97_s28 = scalar_lea.vmem %s25_s20, 256  ;;  %p102_p7 = scmp.lt.s32.totalorder %s25_s20, %s25_s20 }
  0x11   :  { %p98_p6 = scmp.ne.s32.totalorder %s25_s20, %s97_s28  ;;  %p103_p8 = scmp.lt.s32.totalorder %s97_s28, %s97_s28 }
  0x13   :  { %p104_p9 = por %p103_p8, %p102_p7 }
  0x15   :  { %p105_p10 = pnand %p104_p9, %p98_p6 }
  0x17   :  { %108 = shalt.err (!%p105_p10)
}
  0x18   :  { %27 = dma.hbm_to_vmem [thread:$0]  %s192_s1, 256, %s25_s20, [#allocation3]  }
  0x19   :  { %131 = dma.done.wait [#allocation5], 16  }
  0x1a   :  { %132 = vsyncadd [#allocation5], 4294967280 }
  0x1b   :  { %133 = dma.done.wait [#allocation3], 256  }
  0x1c   :  { %134 = vsyncadd [#allocation3], 4294967040 }
  0x1d   :  { %34 = sfence }
  0x1e   :  { %s35_s30 = sld [smem:[#allocation2]]  ;;  %s69_s3 = sld [smem:[#allocation2 + $0x1]]  ;;  %v37_v0 = vld [vmem:[#allocation6] sm:$0xff]  ;;  %v38_v1 = vld [vmem:[#allocation6 + $0x8] sm:$0xff] }
  0x1f   :  { %s139_s1 = smov [#allocation7]  }
  0x20   :  { %s59_s4 = sshll.u32 %s139_s1, 4  ;;  %s60_s4 = int_to_ptr.vmem [resolvable:$true] %s59_s4 }
  0x21   :  { %s109_s5 = scalar_lea.vmem %s60_s4, 256  ;;  %p114_p12 = scmp.lt.s32.totalorder %s60_s4, %s60_s4 }
  0x22   :  { %p110_p11 = scmp.ne.s32.totalorder %s60_s4, %s109_s5  ;;  %p115_p13 = scmp.lt.s32.totalorder %s109_s5, %s109_s5 }
  0x24   :  { %v39_v2 = vstv %s35_s30  ;;  %v44_v5 = vstv %s69_s3  ;;  %p116_p0 = por %p115_p13, %p114_p12 }
  0x25   :  { %v40_v3 = vsub.f32 %v37_v0, %v39_v2  ;;  %v41_v4 = vsub.f32 %v38_v1, %v39_v2 }
  0x26   :  { %p117_p1 = pnand %p116_p0, %p110_p11 }
  0x27   :  { %v42_v6 = vmul.f32 %v40_v3, %v40_v3  ;;  %v43_v7 = vmul.f32 %v41_v4, %v41_v4 }
  0x29   :  { %v45_v8 = vmul.f32 %v44_v5, %v42_v6  ;;  %v46_v9 = vmul.f32 %v44_v5, %v43_v7 }
  0x2b   :  { %v47_v10 = vmul.f32 1.442695, %v45_v8  ;;  %v49_v11 = vmul.f32 1.442695, %v46_v9 }
  0x2d   :  { %73 = vpow2.f32 %v47_v10 }
  0x2e   :  { %75 = vpow2.f32 %v49_v11 }
  0x37   :  { %v74_v12 = vpop.eup %73 }
  0x38   :  { %v76_v13 = vpop.eup %75  ;;  %51 = vst [vmem:[#allocation7] sm:$0xff] %v74_v12 }
  0x39   :  { %52 = vst [vmem:[#allocation7 + $0x8] sm:$0xff] %v76_v13 }
  0x3a   :  { %120 = shalt.err (!%p117_p1)
}
  0x3b   :  { %s121_s8 = scalar_lea.hbm %s193_s2, 256 }
  0x3c   :  { %p122_p2 = scmp.ne.s32.totalorder %s193_s2, %s121_s8  ;;  %p125_p3 = scmp.lt.u32.totalorder %s121_s8, %s193_s2 }
  0x3e   :  { %p127_p4 = pnand %p125_p3, %p122_p2 }
  0x40   :  { %130 = shalt.err (!%p127_p4)
}
  0x41   :  { %62 = dma.vmem_to_hbm [thread:$0]  %s60_s4, 256, %s193_s2, [#allocation4]  }
  0x42   :  { %135 = dma.done.wait [#allocation4], 256  }
  0x43   :  { %136 = vsyncadd [#allocation4], 4294967040 }
  0x44   :  { %66 = vsyncpa [#allocation3], 1 }
  0x45   :  { %67 = vsyncpa [#allocation4], 1 }
  0x46   :  { %68 = vsyncpa [#allocation5], 1 }

</bundles_post_ra>
